<compile_context>
chip_gen: v6e
topology: v6e:2x2x1
jax: 0.10.0
libtpu: 0.0.40
codegen_flags: <defaults>
</compile_context>

<pallas_src>
import math

import jax
import jax.numpy as jnp
from jax import lax
from jax.experimental import pallas as pl
from jax.experimental.pallas import tpu as pltpu


# ----------------------------------------------------------------------------
# Kernel factory: fused QKV projection + multi-head attention.
# Grid = (batch, query_tile).  K/V projection cached in VMEM scratch per batch.
# ----------------------------------------------------------------------------
def _make_kernel(num_heads, head_dim, q_tile, compute_dtype,
                 with_probs, approx_reciprocal):
    H = num_heads * head_dim

    # Pack heads into groups so each context store covers a multiple of 128
    # lanes (unmasked full-vreg vst) whenever head_dim divides 128.
    if head_dim < 128 and 128 % head_dim == 0:
        heads_per_group = math.gcd(num_heads, 128 // head_dim)
    else:
        heads_per_group = 1
    num_groups = num_heads // heads_per_group
    group_w = heads_per_group * head_dim

    def kernel(x_ref, wq_ref, bq_ref, wkv_ref, bkv_ref, mask_ref, *refs):
        if with_probs:
            ctx_ref, probs_ref, kv_ref = refs
        else:
            ctx_ref, kv_ref = refs
            probs_ref = None

        qi = pl.program_id(1)

        # --- K/V projection for the whole sequence, once per batch element.
        # (q-tile axis is the inner "arbitrary" grid axis, so qi==0 runs
        #  before any other q step of this batch element.)
        @pl.when(qi == 0)
        def _():
            kv = lax.dot_general(x_ref[0], wkv_ref[...],
                                 (((1,), (0,)), ((), ())),
                                 preferred_element_type=jnp.float32)
            kv_ref[...] = (kv + bkv_ref[...]).astype(kv_ref.dtype)

        # --- Q projection for this query tile (scale folded into wq/bq).
        q_start = pl.multiple_of(qi * q_tile, q_tile)
        xq = x_ref[0, pl.ds(q_start, q_tile), :]                 # (Tq, H)
        q = lax.dot_general(xq, wq_ref[...], (((1,), (0,)), ((), ())),
                            preferred_element_type=jnp.float32)
        q = (q + bq_ref[...]).astype(compute_dtype)              # one downcast

        m = mask_ref[0, 0]                                       # (1, S) additive

        # --- Per-head attention, stored per 128-lane-aligned head group.
        for g in range(num_groups):
            parts = []
            for hh in range(heads_per_group):
                h = g * heads_per_group + hh
                lo, hi = h * head_dim, (h + 1) * head_dim
                qh = q[:, lo:hi]                                  # (Tq, d)
                kh = kv_ref[:, lo:hi]                             # (S, d)
                vh = kv_ref[:, H + lo:H + hi]                     # (S, d)

                # scores = q @ k^T  ('qd,kd->qk'): MXU takes K transposed
                # for free, no XLU transpose.
                s = lax.dot_general(qh, kh, (((1,), (1,)), ((), ())),
                                    preferred_element_type=jnp.float32)
                s = s + m
                s = s - jnp.max(s, axis=-1, keepdims=True)
                e = jnp.exp(s)
                denom = jnp.sum(e, axis=-1, keepdims=True)
                p = e * pl.reciprocal(denom, approx=approx_reciprocal)

                if with_probs:
                    probs_ref[0, h] = p.astype(probs_ref.dtype)

                parts.append(jnp.dot(p.astype(compute_dtype), vh,
                                     preferred_element_type=jnp.float32))

            grp = parts[0] if heads_per_group == 1 else jnp.concatenate(parts, -1)
            ctx_ref[0, :, g * group_w:(g + 1) * group_w] = grp.astype(ctx_ref.dtype)

    return kernel


# ----------------------------------------------------------------------------
# Param prep (runs once at model-load time, not per forward call):
#   * transpose PyTorch [out, in] Linear weights to [in, out] (canonical MXU),
#   * fuse K/V weights, fold 1/sqrt(d) into the query projection,
#   * cast weights to the compute dtype (halves VMEM/DMA for bf16).
# ----------------------------------------------------------------------------
def prepare_fused_params(params, num_heads, compute_dtype=jnp.float32):
    H = params["wq"].shape[0]
    d = H // num_heads
    scale = 1.0 / math.sqrt(d)
    wq_t = (params["wq"] * scale).T.astype(compute_dtype)                 # (H, H)
    wkv_t = jnp.concatenate([params["wk"], params["wv"]], axis=0).T \
        .astype(compute_dtype)                                            # (H, 2H)
    bq = (params["bq"] * scale)[None, :].astype(jnp.float32)              # (1, H)
    bkv = jnp.concatenate([params["bk"], params["bv"]])[None, :] \
        .astype(jnp.float32)                                              # (1, 2H)
    return wq_t, bq, wkv_t, bkv


def _resident_spec(shape, index_map):
    # Grid-invariant operand: single-buffer it to halve its VMEM footprint.
    # Fall back gracefully if this JAX version rejects pipeline_mode.
    try:
        return pl.BlockSpec(shape, index_map, pipeline_mode=pl.Buffered(1))
    except Exception:
        return pl.BlockSpec(shape, index_map)


# ----------------------------------------------------------------------------
# Module wrapper (forward pass).
# ----------------------------------------------------------------------------
def roberta_self_attention(hidden_states, params, num_heads,
                           attention_mask=None, output_attentions=False,
                           compute_dtype=jnp.float32, probs_dtype=jnp.float32,
                           q_tile=None, approx_reciprocal=False):
    B, S, H = hidden_states.shape
    d = H // num_heads

    if attention_mask is None:
        attention_mask = jnp.zeros((B, 1, 1, S), jnp.float32)
    attention_mask = attention_mask.astype(jnp.float32)

    # Query-tile size: keep full S for short sequences, tile at 256/128 rows
    # for long ones (caps scores at Tq x S and keeps MXU M >= 256 at scale).
    if q_tile is None:
        if S <= 256:
            q_tile = S
        elif S % 256 == 0:
            q_tile = 256
        elif S % 128 == 0:
            q_tile = 128
        else:
            q_tile = S
    assert S % q_tile == 0 and (q_tile == S or q_tile % 8 == 0)
    n_q = S // q_tile

    wq_t, bq, wkv_t, bkv = prepare_fused_params(params, num_heads, compute_dtype)
    x = hidden_states.astype(compute_dtype)   # cast once in the wrapper

    kernel = _make_kernel(num_heads, d, q_tile, compute_dtype,
                          output_attentions, approx_reciprocal)

    x_spec = pl.BlockSpec((1, S, H), lambda b, qi: (b, 0, 0))
    wq_spec = _resident_spec((H, H), lambda b, qi: (0, 0))
    bq_spec = _resident_spec((1, H), lambda b, qi: (0, 0))
    wkv_spec = _resident_spec((H, 2 * H), lambda b, qi: (0, 0))
    bkv_spec = _resident_spec((1, 2 * H), lambda b, qi: (0, 0))
    m_spec = pl.BlockSpec((1, 1, 1, S), lambda b, qi: (b, 0, 0, 0))

    ctx_spec = pl.BlockSpec((1, q_tile, H), lambda b, qi: (b, qi, 0))
    ctx_sds = jax.ShapeDtypeStruct((B, S, H), hidden_states.dtype)

    if output_attentions:
        out_shape = (ctx_sds,
                     jax.ShapeDtypeStruct((B, num_heads, S, S), probs_dtype))
        out_specs = (ctx_spec,
                     pl.BlockSpec((1, num_heads, q_tile, S),
                                  lambda b, qi: (b, 0, qi, 0)))
    else:
        out_shape = ctx_sds
        out_specs = ctx_spec

    out = pl.pallas_call(
        kernel,
        out_shape=out_shape,
        grid_spec=pltpu.PrefetchScalarGridSpec(
            num_scalar_prefetch=0,
            grid=(B, n_q),
            in_specs=[x_spec, wq_spec, bq_spec, wkv_spec, bkv_spec, m_spec],
            out_specs=out_specs,
            scratch_shapes=[pltpu.VMEM((S, 2 * H), compute_dtype)],  # K/V cache
        ),
        compiler_params=pltpu.CompilerParams(
            dimension_semantics=("parallel", "arbitrary"),
            vmem_limit_bytes=64 * 1024 * 1024),
    )(x, wq_t, bq, wkv_t, bkv, attention_mask)

    if output_attentions:
        return out[0], out[1]
    return (out,)


# ----------------------------------------------------------------------------
# Pure-JAX reference (mirrors the PyTorch module) for correctness checks.
# ----------------------------------------------------------------------------
def reference(hidden_states, params, num_heads, attention_mask):
    B, S, H = hidden_states.shape
    d = H // num_heads
    q = hidden_states @ params["wq"].T + params["bq"]
    k = hidden_states @ params["wk"].T + params["bk"]
    v = hidden_states @ params["wv"].T + params["bv"]
    to_heads = lambda t: t.reshape(B, S, num_heads, d).transpose(0, 2, 1, 3)
    q, k, v = to_heads(q), to_heads(k), to_heads(v)
    scores = jnp.einsum("bhqd,bhkd->bhqk", q, k) / math.sqrt(d)
    scores = scores + attention_mask
    probs = jax.nn.softmax(scores, axis=-1)
    ctx = jnp.einsum("bhqk,bhkd->bhqd", probs, v)
    return ctx.transpose(0, 2, 1, 3).reshape(B, S, H), probs


if __name__ == "__main__":
    # Small config: hidden=32, heads=4 (head_dim=8), batch=2, seq=16.
    B, S, H, nH = 2, 16, 32, 4

    key = jax.random.PRNGKey(0)
    k_x, k_wq, k_wk, k_wv, k_bq, k_bk, k_bv, k_m = jax.random.split(key, 8)

    hidden_states = jax.random.normal(k_x, (B, S, H), jnp.float32)
    params = {
        "wq": jax.random.normal(k_wq, (H, H), jnp.float32) * 0.05,
        "wk": jax.random.normal(k_wk, (H, H), jnp.float32) * 0.05,
        "wv": jax.random.normal(k_wv, (H, H), jnp.float32) * 0.05,
        "bq": jax.random.normal(k_bq, (H,), jnp.float32) * 0.05,
        "bk": jax.random.normal(k_bk, (H,), jnp.float32) * 0.05,
        "bv": jax.random.normal(k_bv, (H,), jnp.float32) * 0.05,
    }
    # Additive attention mask (HF convention: 0 keep, -1e9 masked).
    mask_bits = (jax.random.uniform(k_m, (B, S)) > 0.1).astype(jnp.float32)
    attention_mask = ((1.0 - mask_bits) * -1e9)[:, None, None, :]

    ctx_expected, probs_expected = reference(
        hidden_states, params, nH, attention_mask)

    # 1) f32 compute path, probs requested, q_tile=8 exercises the q-tiling /
    #    K-V-scratch path (grid = (2, 2)).
    ctx, probs = roberta_self_attention(
        hidden_states, params, nH, attention_mask,
        output_attentions=True, compute_dtype=jnp.float32, q_tile=8)
    ctx = jax.block_until_ready(ctx)
    probs = jax.block_until_ready(probs)
    assert jnp.allclose(ctx, ctx_expected, atol=2e-3, rtol=2e-3)
    assert jnp.allclose(probs, probs_expected, atol=2e-3, rtol=2e-3)

    # 2) bf16 MXU fast path, probs output gated off entirely, single q tile.
    (ctx_bf16,) = roberta_self_attention(
        hidden_states, params, nH, attention_mask,
        output_attentions=False, compute_dtype=jnp.bfloat16)
    ctx_bf16 = jax.block_until_ready(ctx_bf16)
    assert jnp.allclose(ctx_bf16, ctx_expected, atol=5e-2, rtol=5e-2)

    print("KERNEL_OK")
</pallas_src>

<mosaic_0001>
module attributes {stable_mosaic.version = 11 : i64} {
  func.func @kernel(%arg0: i32, %arg1: i32, %arg2: memref<1x16x32xf32, #tpu.memory_space<vmem>>, %arg3: memref<32x32xf32, #tpu.memory_space<vmem>>, %arg4: memref<1x32xf32, #tpu.memory_space<vmem>>, %arg5: memref<32x64xf32, #tpu.memory_space<vmem>>, %arg6: memref<1x64xf32, #tpu.memory_space<vmem>>, %arg7: memref<1x1x1x16xf32, #tpu.memory_space<vmem>>, %arg8: memref<1x8x32xf32, #tpu.memory_space<vmem>>, %arg9: memref<1x4x8x16xf32, #tpu.memory_space<vmem>>, %arg10: memref<16x64xf32, #tpu.memory_space<vmem>>) attributes {dimension_semantics = [#tpu.dimension_semantics<parallel>, #tpu.dimension_semantics<arbitrary>], iteration_bounds = array<i64: 2, 2>, scalar_prefetch = 0 : i64, scratch_operands = 1 : i64, tpu.core_type = #tpu.core_type<tc>, window_params = [{transform_indices = @transform_0, window_bounds = array<i64: 1, 16, 32>}, {pipeline_mode = #tpu.pipeline_mode<synchronous>, transform_indices = @transform_1, window_bounds = array<i64: 32, 32>}, {pipeline_mode = #tpu.pipeline_mode<synchronous>, transform_indices = @transform_2, window_bounds = array<i64: 1, 32>}, {pipeline_mode = #tpu.pipeline_mode<synchronous>, transform_indices = @transform_3, window_bounds = array<i64: 32, 64>}, {pipeline_mode = #tpu.pipeline_mode<synchronous>, transform_indices = @transform_4, window_bounds = array<i64: 1, 64>}, {transform_indices = @transform_5, window_bounds = array<i64: 1, 1, 1, 16>}, {transform_indices = @transform_6, window_bounds = array<i64: 1, 8, 32>}, {transform_indices = @transform_7, window_bounds = array<i64: 1, 4, 8, 16>}]} {
    %c0_i32 = arith.constant 0 : i32
    %0 = arith.cmpi eq, %arg1, %c0_i32 : i32
    %1 = arith.extui %0 : i1 to i32
    %c0_i32_0 = arith.constant 0 : i32
    %2 = arith.cmpi ne, %1, %c0_i32_0 : i32
    scf.if %2 {
      %c0_51 = arith.constant 0 : index
      %c0_52 = arith.constant 0 : index
      %c0_53 = arith.constant 0 : index
      %99 = vector.load %arg2[%c0_51, %c0_52, %c0_53] : memref<1x16x32xf32, #tpu.memory_space<vmem>>, vector<1x16x32xf32>
      %100 = vector.shape_cast %99 : vector<1x16x32xf32> to vector<16x32xf32>
      %c0_54 = arith.constant 0 : index
      %c0_55 = arith.constant 0 : index
      %101 = vector.load %arg5[%c0_54, %c0_55] : memref<32x64xf32, #tpu.memory_space<vmem>>, vector<32x64xf32>
      %cst_56 = arith.constant dense<0.000000e+00> : vector<16x64xf32>
      %102 = tpu.matmul %100, %101, %cst_56 {dimension_numbers = #tpu.dot_dimension_numbers<[1], [0], [0], [1], [0, 0, 1, 1], [], []>} : vector<16x32xf32>, vector<32x64xf32>, vector<16x64xf32> -> vector<16x64xf32>
      %c0_57 = arith.constant 0 : index
      %c0_58 = arith.constant 0 : index
      %103 = vector.load %arg6[%c0_57, %c0_58] : memref<1x64xf32, #tpu.memory_space<vmem>>, vector<1x64xf32>
      %104 = vector.broadcast %103 : vector<1x64xf32> to vector<16x64xf32>
      %105 = arith.addf %102, %104 : vector<16x64xf32>
      %c0_59 = arith.constant 0 : index
      %c0_60 = arith.constant 0 : index
      %106 = vector.load %arg10[%c0_59, %c0_60] : memref<16x64xf32, #tpu.memory_space<vmem>>, vector<16x64xf32>
      tpu.vector_store %arg10[%c0_59, %c0_60], %105 {strides = array<i32>} : memref<16x64xf32, #tpu.memory_space<vmem>>, vector<16x64xf32>,
    } else {
    }
    %c8_i32 = arith.constant 8 : i32
    %3 = arith.muli %arg1, %c8_i32 : i32
    %4 = tpu.assume_multiple %3, 8 : i32
    %c0 = arith.constant 0 : index
    %5 = arith.index_cast %4 : i32 to index
    %c0_1 = arith.constant 0 : index
    %6 = vector.load %arg2[%c0, %5, %c0_1] : memref<1x16x32xf32, #tpu.memory_space<vmem>>, vector<1x8x32xf32>
    %7 = vector.shape_cast %6 : vector<1x8x32xf32> to vector<8x32xf32>
    %c0_2 = arith.constant 0 : index
    %c0_3 = arith.constant 0 : index
    %8 = vector.load %arg3[%c0_2, %c0_3] : memref<32x32xf32, #tpu.memory_space<vmem>>, vector<32x32xf32>
    %cst = arith.constant dense<0.000000e+00> : vector<8x32xf32>
    %9 = tpu.matmul %7, %8, %cst {dimension_numbers = #tpu.dot_dimension_numbers<[1], [0], [0], [1], [0, 0, 1, 1], [], []>} : vector<8x32xf32>, vector<32x32xf32>, vector<8x32xf32> -> vector<8x32xf32>
    %c0_4 = arith.constant 0 : index
    %c0_5 = arith.constant 0 : index
    %10 = vector.load %arg4[%c0_4, %c0_5] : memref<1x32xf32, #tpu.memory_space<vmem>>, vector<1x32xf32>
    %11 = vector.broadcast %10 : vector<1x32xf32> to vector<8x32xf32>
    %12 = arith.addf %9, %11 : vector<8x32xf32>
    %c0_6 = arith.constant 0 : index
    %c0_7 = arith.constant 0 : index
    %c0_8 = arith.constant 0 : index
    %c0_9 = arith.constant 0 : index
    %13 = vector.load %arg7[%c0_6, %c0_7, %c0_8, %c0_9] : memref<1x1x1x16xf32, #tpu.memory_space<vmem>>, vector<1x1x1x16xf32>
    %14 = vector.shape_cast %13 : vector<1x1x1x16xf32> to vector<1x16xf32>
    %15 = vector.extract_strided_slice %12 {offsets = [0, 0], sizes = [8, 8], strides = [1, 1]} : vector<8x32xf32> to vector<8x8xf32>
    %c0_10 = arith.constant 0 : index
    %c0_11 = arith.constant 0 : index
    %16 = vector.load %arg10[%c0_10, %c0_11] : memref<16x64xf32, #tpu.memory_space<vmem>>, vector<16x8xf32>
    %c0_12 = arith.constant 0 : index
    %c32 = arith.constant 32 : index
    %17 = vector.load %arg10[%c0_12, %c32] : memref<16x64xf32, #tpu.memory_space<vmem>>, vector<16x8xf32>
    %cst_13 = arith.constant dense<0.000000e+00> : vector<8x16xf32>
    %18 = tpu.matmul %15, %16, %cst_13 {dimension_numbers = #tpu.dot_dimension_numbers<[1], [1], [0], [0], [0, 0, 1, 0], [], []>} : vector<8x8xf32>, vector<16x8xf32>, vector<8x16xf32> -> vector<8x16xf32>
    %19 = vector.broadcast %14 : vector<1x16xf32> to vector<8x16xf32>
    %20 = arith.addf %18, %19 : vector<8x16xf32>
    %cst_14 = arith.constant dense<0xFF800000> : vector<8xf32>
    %21 = vector.multi_reduction <maximumf>, %20, %cst_14 [1] : vector<8x16xf32> to vector<8xf32>
    %22 = vector.shape_cast %21 : vector<8xf32> to vector<8x1xf32>
    %23 = vector.broadcast %22 : vector<8x1xf32> to vector<8x16xf32>
    %24 = arith.subf %20, %23 : vector<8x16xf32>
    %25 = math.exp %24 : vector<8x16xf32>
    %cst_15 = arith.constant dense<0.000000e+00> : vector<8xf32>
    %26 = vector.multi_reduction <add>, %25, %cst_15 [1] : vector<8x16xf32> to vector<8xf32>
    %27 = vector.shape_cast %26 : vector<8xf32> to vector<8x1xf32>
    %28 = tpu.reciprocal %27 : vector<8x1xf32> -> vector<8x1xf32>
    %29 = vector.broadcast %28 : vector<8x1xf32> to vector<8x16xf32>
    %30 = arith.mulf %25, %29 : vector<8x16xf32>
    %c0_16 = arith.constant 0 : index
    %c0_17 = arith.constant 0 : index
    %c0_18 = arith.constant 0 : index
    %c0_19 = arith.constant 0 : index
    %31 = vector.load %arg9[%c0_16, %c0_17, %c0_18, %c0_19] : memref<1x4x8x16xf32, #tpu.memory_space<vmem>>, vector<1x1x8x16xf32>
    %32 = vector.shape_cast %31 : vector<1x1x8x16xf32> to vector<8x16xf32>
    %33 = vector.shape_cast %30 : vector<8x16xf32> to vector<1x1x8x16xf32>
    tpu.vector_store %arg9[%c0_16, %c0_17, %c0_18, %c0_19], %33 {strides = array<i32>} : memref<1x4x8x16xf32, #tpu.memory_space<vmem>>, vector<1x1x8x16xf32>,
    %cst_20 = arith.constant dense<0.000000e+00> : vector<8x8xf32>
    %34 = tpu.matmul %30, %17, %cst_20 {dimension_numbers = #tpu.dot_dimension_numbers<[1], [0], [0], [1], [0, 0, 1, 1], [], []>} : vector<8x16xf32>, vector<16x8xf32>, vector<8x8xf32> -> vector<8x8xf32>
    %35 = vector.extract_strided_slice %12 {offsets = [0, 8], sizes = [8, 8], strides = [1, 1]} : vector<8x32xf32> to vector<8x8xf32>
    %c0_21 = arith.constant 0 : index
    %c8 = arith.constant 8 : index
    %36 = vector.load %arg10[%c0_21, %c8] : memref<16x64xf32, #tpu.memory_space<vmem>>, vector<16x8xf32>
    %c0_22 = arith.constant 0 : index
    %c40 = arith.constant 40 : index
    %37 = vector.load %arg10[%c0_22, %c40] : memref<16x64xf32, #tpu.memory_space<vmem>>, vector<16x8xf32>
    %cst_23 = arith.constant dense<0.000000e+00> : vector<8x16xf32>
    %38 = tpu.matmul %35, %36, %cst_23 {dimension_numbers = #tpu.dot_dimension_numbers<[1], [1], [0], [0], [0, 0, 1, 0], [], []>} : vector<8x8xf32>, vector<16x8xf32>, vector<8x16xf32> -> vector<8x16xf32>
    %39 = vector.broadcast %14 : vector<1x16xf32> to vector<8x16xf32>
    %40 = arith.addf %38, %39 : vector<8x16xf32>
    %cst_24 = arith.constant dense<0xFF800000> : vector<8xf32>
    %41 = vector.multi_reduction <maximumf>, %40, %cst_24 [1] : vector<8x16xf32> to vector<8xf32>
    %42 = vector.shape_cast %41 : vector<8xf32> to vector<8x1xf32>
    %43 = vector.broadcast %42 : vector<8x1xf32> to vector<8x16xf32>
    %44 = arith.subf %40, %43 : vector<8x16xf32>
    %45 = math.exp %44 : vector<8x16xf32>
    %cst_25 = arith.constant dense<0.000000e+00> : vector<8xf32>
    %46 = vector.multi_reduction <add>, %45, %cst_25 [1] : vector<8x16xf32> to vector<8xf32>
    %47 = vector.shape_cast %46 : vector<8xf32> to vector<8x1xf32>
    %48 = tpu.reciprocal %47 : vector<8x1xf32> -> vector<8x1xf32>
    %49 = vector.broadcast %48 : vector<8x1xf32> to vector<8x16xf32>
    %50 = arith.mulf %45, %49 : vector<8x16xf32>
    %c0_26 = arith.constant 0 : index
    %c1 = arith.constant 1 : index
    %c0_27 = arith.constant 0 : index
    %c0_28 = arith.constant 0 : index
    %51 = vector.load %arg9[%c0_26, %c1, %c0_27, %c0_28] : memref<1x4x8x16xf32, #tpu.memory_space<vmem>>, vector<1x1x8x16xf32>
    %52 = vector.shape_cast %51 : vector<1x1x8x16xf32> to vector<8x16xf32>
    %53 = vector.shape_cast %50 : vector<8x16xf32> to vector<1x1x8x16xf32>
    tpu.vector_store %arg9[%c0_26, %c1, %c0_27, %c0_28], %53 {strides = array<i32>} : memref<1x4x8x16xf32, #tpu.memory_space<vmem>>, vector<1x1x8x16xf32>,
    %cst_29 = arith.constant dense<0.000000e+00> : vector<8x8xf32>
    %54 = tpu.matmul %50, %37, %cst_29 {dimension_numbers = #tpu.dot_dimension_numbers<[1], [0], [0], [1], [0, 0, 1, 1], [], []>} : vector<8x16xf32>, vector<16x8xf32>, vector<8x8xf32> -> vector<8x8xf32>
    %55 = vector.extract_strided_slice %12 {offsets = [0, 16], sizes = [8, 8], strides = [1, 1]} : vector<8x32xf32> to vector<8x8xf32>
    %c0_30 = arith.constant 0 : index
    %c16 = arith.constant 16 : index
    %56 = vector.load %arg10[%c0_30, %c16] : memref<16x64xf32, #tpu.memory_space<vmem>>, vector<16x8xf32>
    %c0_31 = arith.constant 0 : index
    %c48 = arith.constant 48 : index
    %57 = vector.load %arg10[%c0_31, %c48] : memref<16x64xf32, #tpu.memory_space<vmem>>, vector<16x8xf32>
    %cst_32 = arith.constant dense<0.000000e+00> : vector<8x16xf32>
    %58 = tpu.matmul %55, %56, %cst_32 {dimension_numbers = #tpu.dot_dimension_numbers<[1], [1], [0], [0], [0, 0, 1, 0], [], []>} : vector<8x8xf32>, vector<16x8xf32>, vector<8x16xf32> -> vector<8x16xf32>
    %59 = vector.broadcast %14 : vector<1x16xf32> to vector<8x16xf32>
    %60 = arith.addf %58, %59 : vector<8x16xf32>
    %cst_33 = arith.constant dense<0xFF800000> : vector<8xf32>
    %61 = vector.multi_reduction <maximumf>, %60, %cst_33 [1] : vector<8x16xf32> to vector<8xf32>
    %62 = vector.shape_cast %61 : vector<8xf32> to vector<8x1xf32>
    %63 = vector.broadcast %62 : vector<8x1xf32> to vector<8x16xf32>
    %64 = arith.subf %60, %63 : vector<8x16xf32>
    %65 = math.exp %64 : vector<8x16xf32>
    %cst_34 = arith.constant dense<0.000000e+00> : vector<8xf32>
    %66 = vector.multi_reduction <add>, %65, %cst_34 [1] : vector<8x16xf32> to vector<8xf32>
    %67 = vector.shape_cast %66 : vector<8xf32> to vector<8x1xf32>
    %68 = tpu.reciprocal %67 : vector<8x1xf32> -> vector<8x1xf32>
    %69 = vector.broadcast %68 : vector<8x1xf32> to vector<8x16xf32>
    %70 = arith.mulf %65, %69 : vector<8x16xf32>
    %c0_35 = arith.constant 0 : index
    %c2 = arith.constant 2 : index
    %c0_36 = arith.constant 0 : index
    %c0_37 = arith.constant 0 : index
    %71 = vector.load %arg9[%c0_35, %c2, %c0_36, %c0_37] : memref<1x4x8x16xf32, #tpu.memory_space<vmem>>, vector<1x1x8x16xf32>
    %72 = vector.shape_cast %71 : vector<1x1x8x16xf32> to vector<8x16xf32>
    %73 = vector.shape_cast %70 : vector<8x16xf32> to vector<1x1x8x16xf32>
    tpu.vector_store %arg9[%c0_35, %c2, %c0_36, %c0_37], %73 {strides = array<i32>} : memref<1x4x8x16xf32, #tpu.memory_space<vmem>>, vector<1x1x8x16xf32>,
    %cst_38 = arith.constant dense<0.000000e+00> : vector<8x8xf32>
    %74 = tpu.matmul %70, %57, %cst_38 {dimension_numbers = #tpu.dot_dimension_numbers<[1], [0], [0], [1], [0, 0, 1, 1], [], []>} : vector<8x16xf32>, vector<16x8xf32>, vector<8x8xf32> -> vector<8x8xf32>
    %75 = vector.extract_strided_slice %12 {offsets = [0, 24], sizes = [8, 8], strides = [1, 1]} : vector<8x32xf32> to vector<8x8xf32>
    %c0_39 = arith.constant 0 : index
    %c24 = arith.constant 24 : index
    %76 = vector.load %arg10[%c0_39, %c24] : memref<16x64xf32, #tpu.memory_space<vmem>>, vector<16x8xf32>
    %c0_40 = arith.constant 0 : index
    %c56 = arith.constant 56 : index
    %77 = vector.load %arg10[%c0_40, %c56] : memref<16x64xf32, #tpu.memory_space<vmem>>, vector<16x8xf32>
    %cst_41 = arith.constant dense<0.000000e+00> : vector<8x16xf32>
    %78 = tpu.matmul %75, %76, %cst_41 {dimension_numbers = #tpu.dot_dimension_numbers<[1], [1], [0], [0], [0, 0, 1, 0], [], []>} : vector<8x8xf32>, vector<16x8xf32>, vector<8x16xf32> -> vector<8x16xf32>
    %79 = vector.broadcast %14 : vector<1x16xf32> to vector<8x16xf32>
    %80 = arith.addf %78, %79 : vector<8x16xf32>
    %cst_42 = arith.constant dense<0xFF800000> : vector<8xf32>
    %81 = vector.multi_reduction <maximumf>, %80, %cst_42 [1] : vector<8x16xf32> to vector<8xf32>
    %82 = vector.shape_cast %81 : vector<8xf32> to vector<8x1xf32>
    %83 = vector.broadcast %82 : vector<8x1xf32> to vector<8x16xf32>
    %84 = arith.subf %80, %83 : vector<8x16xf32>
    %85 = math.exp %84 : vector<8x16xf32>
    %cst_43 = arith.constant dense<0.000000e+00> : vector<8xf32>
    %86 = vector.multi_reduction <add>, %85, %cst_43 [1] : vector<8x16xf32> to vector<8xf32>
    %87 = vector.shape_cast %86 : vector<8xf32> to vector<8x1xf32>
    %88 = tpu.reciprocal %87 : vector<8x1xf32> -> vector<8x1xf32>
    %89 = vector.broadcast %88 : vector<8x1xf32> to vector<8x16xf32>
    %90 = arith.mulf %85, %89 : vector<8x16xf32>
    %c0_44 = arith.constant 0 : index
    %c3 = arith.constant 3 : index
    %c0_45 = arith.constant 0 : index
    %c0_46 = arith.constant 0 : index
    %91 = vector.load %arg9[%c0_44, %c3, %c0_45, %c0_46] : memref<1x4x8x16xf32, #tpu.memory_space<vmem>>, vector<1x1x8x16xf32>
    %92 = vector.shape_cast %91 : vector<1x1x8x16xf32> to vector<8x16xf32>
    %93 = vector.shape_cast %90 : vector<8x16xf32> to vector<1x1x8x16xf32>
    tpu.vector_store %arg9[%c0_44, %c3, %c0_45, %c0_46], %93 {strides = array<i32>} : memref<1x4x8x16xf32, #tpu.memory_space<vmem>>, vector<1x1x8x16xf32>,
    %cst_47 = arith.constant dense<0.000000e+00> : vector<8x8xf32>
    %94 = tpu.matmul %90, %77, %cst_47 {dimension_numbers = #tpu.dot_dimension_numbers<[1], [0], [0], [1], [0, 0, 1, 1], [], []>} : vector<8x16xf32>, vector<16x8xf32>, vector<8x8xf32> -> vector<8x8xf32>
    %95 = tpu.concatenate %34, %54, %74, %94 in 1 : vector<8x8xf32>, vector<8x8xf32>, vector<8x8xf32>, vector<8x8xf32> -> vector<8x32xf32>
    %c0_48 = arith.constant 0 : index
    %c0_49 = arith.constant 0 : index
    %c0_50 = arith.constant 0 : index
    %96 = vector.load %arg8[%c0_48, %c0_49, %c0_50] : memref<1x8x32xf32, #tpu.memory_space<vmem>>, vector<1x8x32xf32>
    %97 = vector.shape_cast %96 : vector<1x8x32xf32> to vector<8x32xf32>
    %98 = vector.shape_cast %95 : vector<8x32xf32> to vector<1x8x32xf32>
    tpu.vector_store %arg8[%c0_48, %c0_49, %c0_50], %98 {strides = array<i32>} : memref<1x8x32xf32, #tpu.memory_space<vmem>>, vector<1x8x32xf32>,
    return
  }
  func.func @transform_0(%arg0: i32, %arg1: i32) -> (i32, i32, i32) {
    %c0_i32 = arith.constant 0 : i32
    %c0_i32_0 = arith.constant 0 : i32
    %c0_i32_1 = arith.constant 0 : i32
    return %arg0, %c0_i32, %c0_i32_0 : i32, i32, i32
  }
  func.func @transform_1(%arg0: i32, %arg1: i32) -> (i32, i32) {
    %c0_i32 = arith.constant 0 : i32
    %c0_i32_0 = arith.constant 0 : i32
    %c0_i32_1 = arith.constant 0 : i32
    return %c0_i32, %c0_i32_0 : i32, i32
  }
  func.func @transform_2(%arg0: i32, %arg1: i32) -> (i32, i32) {
    %c0_i32 = arith.constant 0 : i32
    %c0_i32_0 = arith.constant 0 : i32
    %c0_i32_1 = arith.constant 0 : i32
    return %c0_i32, %c0_i32_0 : i32, i32
  }
  func.func @transform_3(%arg0: i32, %arg1: i32) -> (i32, i32) {
    %c0_i32 = arith.constant 0 : i32
    %c0_i32_0 = arith.constant 0 : i32
    %c0_i32_1 = arith.constant 0 : i32
    return %c0_i32, %c0_i32_0 : i32, i32
  }
  func.func @transform_4(%arg0: i32, %arg1: i32) -> (i32, i32) {
    %c0_i32 = arith.constant 0 : i32
    %c0_i32_0 = arith.constant 0 : i32
    %c0_i32_1 = arith.constant 0 : i32
    return %c0_i32, %c0_i32_0 : i32, i32
  }
  func.func @transform_5(%arg0: i32, %arg1: i32) -> (i32, i32, i32, i32) {
    %c0_i32 = arith.constant 0 : i32
    %c0_i32_0 = arith.constant 0 : i32
    %c0_i32_1 = arith.constant 0 : i32
    %c0_i32_2 = arith.constant 0 : i32
    return %arg0, %c0_i32, %c0_i32_0, %c0_i32_1 : i32, i32, i32, i32
  }
  func.func @transform_6(%arg0: i32, %arg1: i32) -> (i32, i32, i32) {
    %c0_i32 = arith.constant 0 : i32
    %c0_i32_0 = arith.constant 0 : i32
    return %arg0, %arg1, %c0_i32 : i32, i32, i32
  }
  func.func @transform_7(%arg0: i32, %arg1: i32) -> (i32, i32, i32, i32) {
    %c0_i32 = arith.constant 0 : i32
    %c0_i32_0 = arith.constant 0 : i32
    %c0_i32_1 = arith.constant 0 : i32
    return %arg0, %c0_i32, %arg1, %c0_i32_0 : i32, i32, i32, i32
  }
}

</mosaic_0001>

<bundles_post_ra>
// kernel: tpu_custom_call.1
= control target key start
LH: loop header
LB: loop body
LE: loop exit
PB: predicated region body
PF: predicated region fallthrough
CT: control target
= control target key end

     0   :  { %s2513_s0 = inlined_call_operand.hbm [shape: f32[2,16,32], index: 0, kind: input, shape index: {}]   ;;  %s2514_s1 = inlined_call_operand.hbm [shape: f32[32,32], index: 1, kind: input, shape index: {}]   ;;  %s2515_s2 = inlined_call_operand.vmem [shape: f32[1,32], index: 2, kind: input, shape index: {}]   ;;  %s2516_s3 = inlined_call_operand.hbm [shape: f32[32,64], index: 3, kind: input, shape index: {}]   ;;  %s2517_s4 = inlined_call_operand.vmem [shape: f32[1,64], index: 4, kind: input, shape index: {}]   ;;  %s2518_s5 = inlined_call_operand.vmem [shape: f32[2,1,1,16], index: 5, kind: input, shape index: {}]   ;;  %s2519_s6 = inlined_call_operand.hbm [shape: f32[2,16,32], index: 6, kind: output, shape index: {0}]   ;;  %s2520_s7 = inlined_call_operand.hbm [shape: f32[2,4,16,16], index: 7, kind: output, shape index: {1}]  }
   0x1   :  { %2531 = sst [smem:[#allocation21_spill]] %s2514_s1 }
   0x2   :  { %2532 = sst [smem:[#allocation22_spill]] %s2515_s2 }
   0x3   :  { %2533 = sst [smem:[#allocation23_spill]] %s2516_s3 }
   0x4   :  { %2534 = sst [smem:[#allocation24_spill]] %s2517_s4 }
   0x5   :  { %2535 = sst [smem:[#allocation25_spill]] %s2519_s6 }
   0x6   :  { %2536 = sst [smem:[#allocation26_spill]] %s2520_s7 }
   0x7   :  { %13 = vsyncpa [#allocation4], 0 }
   0x8   :  { %15 = vsyncpa [#allocation4 + $0x1], 0 }
   0x9   :  { %16 = vsyncpa [#allocation7], 0 }
   0xa   :  { %17 = vsyncpa [#allocation5], 0 }
   0xb   :  { %19 = vsyncpa [#allocation5 + $0x1], 0 }
   0xc   :  { %20 = vsyncpa [#allocation11], 0 }
   0xd   :  { %22 = vsyncpa [#allocation11 + $0x1], 0  ;;  %s2095_s24 = smov 0   ;;  %s2097_s25 = smov 0  }
   0xe   :  { %s2099_s26 = smov 0   ;;  %s2101_s27 = smov 0  }
   0xf   :  { %s2103_s28 = smov 0   ;;  %s2105_s29 = smov 0  }
  0x10   :  { %s2107_s30 = smov 0   ;;  %s2109_s8 = smov 0  }
  0x11   :  { %s2111_s9 = smov 0   ;;  %s2113_s10 = smov 0  }
  0x12   :  { %s2115_s11 = smov 0  }
  0x13 LB: > { %2537 = sst [smem:[#allocation16_spill]] %s1992_s24  ;;  %s1474_s12 = sadd.s32 4294967295, %s2032_s11   ;;  %s2032_s11 = sphi %s2115_s11, %s28_s11   ;;  %s2028_s10 = sphi %s2113_s10, %s2573_s10   ;;  %s2024_s9 = sphi %s2111_s9, %s2572_s9   ;;  %s2020_s8 = sphi %s2109_s8, %s2571_s8   ;;  %s2016_s30 = sphi %s2107_s30, %s2563_s30   ;;  %s2012_s29 = sphi %s2105_s29, %s2570_s29   ;;  %s2008_s28 = sphi %s2103_s28, %s2569_s28   ;;  %s2004_s27 = sphi %s2101_s27, %s2568_s27   ;;  %s2000_s26 = sphi %s2099_s26, %s2567_s26   ;;  %s1996_s25 = sphi %s2097_s25, %s2566_s25   ;;  %s1992_s24 = sphi %s2095_s24, %s2565_s24  }
  0x14   : > { %2538 = sst [smem:[#allocation17_spill]] %s2024_s9  ;;  %s1475_s13 = sadd.s32 4294967294, %s2032_s11  }
  0x15   : > { %p60_p0 = scmp.ne.s32.totalorder %s2008_s28, %s2004_s27  ;;  %p2151_p1 = scmp.eq.s32.totalorder %s1474_s12, 0 }
  0x16   : > { %p195_p2 = scmp.ne.s32.totalorder %s2000_s26, %s1996_s25  ;;  %p196_p4 = scmp.eq.s32.totalorder %s1474_s12, 3 }
  0x17   : > { %p2160_p3 = por %p2151_p1, %p60_p0  ;;  %p201_p5 = scmp.ne.s32.totalorder %s1996_s25, %s1992_s24 }
  0x18   : > { %p202_p6 = scmp.eq.s32.totalorder %s1475_s13, 3  ;;  %p2166_p7 = por %p196_p4, %p195_p2 }
  0x19   : > { %p1476_p8 = scmp.ge.s32.totalorder %s2032_s11, 1  ;;  %p237_p10 = scmp.lt.s32.totalorder %s2032_s11, 5 }
  0x1a   : > { %s2541_s17 = scalar_select %p2166_p7, 1, 0 }
  0x1b   : > { %p2171_p9 = por %p202_p6, %p201_p5  ;;  %p2176_p11 = pnand %p1476_p8, %p237_p10 }
  0x1c   : > { %2542 = sst [smem:[#allocation18_spill]] %s2541_s17  ;;  %s2034_s20 = smov [#allocation6]  }
  0x1d   : > { %s2543_s18 = scalar_select %p2171_p9, 1, 0 }
  0x1e   : > { %s249_s21 = sshll.u32 %s2034_s20, 4  ;;  %p1652_p12 = pneg %p2176_p11  ;;  %s250_s21 = int_to_ptr.vmem [resolvable:$true] %s249_s21 }
  0x1f   : > { %2544 = sst [smem:[#allocation19_spill]] %s2543_s18  ;;  %s2035_s23 = smov [#allocation8]  }
  0x20   : > { %p2184_p13 = pnand %p1652_p12, %p2151_p1  ;;  %s265_s27 = sshll.u32 %s2035_s23, 4  ;;  %s266_s27 = int_to_ptr.vmem [resolvable:$true] %s265_s27 }
  0x21   : > { %s1809_s12 = scalar_lea.vmem %s250_s21, 512  ;;  %p1817_p6 = scmp.lt.s32.totalorder %s250_s21, %s250_s21 }
  0x22   : > { %p1800_p0 = pneg %p2184_p13  ;;  %p1810_p2 = scmp.ne.s32.totalorder %s250_s21, %s1809_s12 }
  0x23   : > { %p1818_p8 = scmp.lt.s32.totalorder %s1809_s12, %s1809_s12 }
  0x24   : > { %p1812_p4 = pnand %p1810_p2, %p1800_p0 }
  0x25   : > { %p1819_p10 = por %p1818_p8, %p1817_p6 }
  0x26   : > { %p1813_p5 = pneg %p1812_p4 }
  0x28   : > { %p1820_p12 = pnand %p1819_p10, %p1813_p5 }
  0x2a   : > { %1823 = shalt.err (!%p1820_p12)
}
  0x2b   : > { %s2523_s13 = smov 128   ;;  %s2524_s20 = smov 8  }
  0x2c   : > { %s2547_s1 = sld [smem:[#allocation21_spill]]  ;;  %s1835_s18 = scalar_lea.vmem %s266_s27, 512 }
  0x2d   : > { %p1836_p2 = scmp.ne.s32.totalorder %s266_s27, %s1835_s18  ;;  %p1843_p5 = scmp.lt.s32.totalorder %s266_s27, %s266_s27 }
  0x2e   : > { %p1844_p8 = scmp.lt.s32.totalorder %s1835_s18, %s1835_s18 }
  0x2f   : > { %p1838_p4 = pnand %p1836_p2, %p1800_p0 }
  0x30   : > { %p1845_p10 = por %p1844_p8, %p1843_p5 }
  0x31   : > { %p1839_p6 = pneg %p1838_p4 }
  0x32   : > { %1655 = dma.hbm_to_vmem [thread:$0]  (!%p2184_p13), %s2547_s1, 512, %s250_s21, [#allocation7], %s2523_s13, %s2523_s13, %s2524_s20  }
  0x33   : > { %p1846_p12 = pnand %p1845_p10, %p1839_p6 }
  0x35   : > { %1849 = shalt.err (!%p1846_p12)
}
  0x36   : > { %s2548_s3 = sld [smem:[#allocation23_spill]]  ;;  %s37_s15 = sadd.s32 1, %s2024_s9 }
  0x37   : > { %s40_s18 = sadd.s32 1, %s2028_s10  ;;  %p38_p0 = scmp.ge.s32.totalorder %s37_s15, 2 }
  0x38   : > { %s47_s21 = sadd.s32 1, %s2012_s29  ;;  %p54_p2 = scmp.ne.s32.totalorder %s2012_s29, %s2008_s28 }
  0x39   : > { %p55_p4 = scmp.eq.s32.totalorder %s2032_s11, 0  ;;  %s2575_s15 = smov (%p38_p0, %s37_s15), 0 }
  0x3a   : > { %2549 = sst [smem:[#allocation20_spill]] %s2575_s15  ;;  %s2577_s18 = smov (!%p38_p0, %s40_s18), %s2028_s10 }
  0x3b   : > { %p2221_p6 = por %p55_p4, %p54_p2  ;;  %s181_s22 = ssub.s32 %s2024_s9, %s2575_s15 }
  0x3c   : > { %1658 = dma.hbm_to_vmem [thread:$0]  (!%p2184_p13), %s2548_s3, 512, %s266_s27, [#allocation7], %s2523_s13, %s2523_s13, %s2524_s20  }
  0x3d   : > { %p42_p13 = scmp.ge.s32.totalorder %s2577_s18, 2  ;;  %p1672_p5 = scmp.lt.s32.totalorder %s2032_s11, 4 }
  0x3e   : > { %s282_s27 = sand.u32 1, %s2012_s29   ;;  %s1524_s23 = sshll.u32 %s2028_s10, 8 }
  0x3f   : > { %s2579_s18 = smov (%p42_p13, %s2577_s18), 0  ;;  %s1480_s12 = sshll.u32 %s282_s27, 4 }
  0x40   : > { %s44_s13 = ssub.s32 %s2028_s10, %s2579_s18  ;;  %s292_s6 = scalar_lea.hbm %s2513_s0, %s1524_s23 }
  0x41   : > { %p45_p8 = scmp.eq.s32.totalorder %s44_s13, 0  ;;  %s182_s20 = sor.u32 %s181_s22, %s44_s13 }
  0x42   : > { %p183_p10 = scmp.eq.s32.totalorder %s182_s20, 0  ;;  %s2551_s15 = sadd.s32 1, %s2000_s26 }
  0x43   : > { %s2238_s7 = scalar_select %p45_p8, %s2012_s29, %s47_s21  }
  0x44   : > { %s2243_s9 = scalar_select %p183_p10, %s2000_s26, %s2551_s15  }
  0x45   : > { %s286_s17 = scalar_lea.vmem [#allocation3], %s1480_s12  ;;  %p2249_p12 = pnand %p1672_p5, %p2221_p6 }
  0x46   : > { %s293_s2 = sshll.u32 %s286_s17, 4  ;;  %s283_s13 = scalar_lea.sflag [#allocation4], %s282_s27  ;;  %s294_s2 = int_to_ptr.vmem [resolvable:$true] %s293_s2 }
  0x47   : > { %p1852_p0 = pneg %p2249_p12  ;;  %s1863_s1 = scalar_lea.vmem %s294_s2, 256 }
  0x48   : > { %p1864_p2 = scmp.ne.s32.totalorder %s294_s2, %s1863_s1  ;;  %s2038_s3 = smov [#allocation3]  }
  0x49   : > { %s1868_s20 = sshll.u32 %s2038_s3, 4  ;;  %s1869_s20 = int_to_ptr.vmem [resolvable:$false] %s1868_s20 }
  0x4a   : > { %p1866_p4 = pnand %p1864_p2, %p1852_p0  ;;  %s1870_s15 = scalar_lea.vmem %s1869_s20, 512 }
  0x4b   : > { %p1871_p8 = scmp.lt.s32.totalorder %s294_s2, %s1869_s20  ;;  %p1872_p10 = scmp.lt.s32.totalorder %s1870_s15, %s1863_s1 }
  0x4c   : > { %p1867_p13 = pneg %p1866_p4 }
  0x4d   : > { %p1873_p9 = por %p1872_p10, %p1871_p8 }
  0x4f   : > { %p1874_p6 = pnand %p1873_p9, %p1867_p13 }
  0x51   : > { %1877 = shalt.err (!%p1874_p6)
}
  0x52   : > { %s2553_s17 = smov 8   ;;  %s2554_s21 = smov 128  }
  0x53   : > { %1662 = dma.hbm_to_vmem [thread:$0]  (!%p2249_p12), %s292_s6, 256, %s294_s2, %s283_s13, %s2554_s21, %s2554_s21, %s2553_s17  }
  0x54   : > { %311 = sbr.rel (%p2176_p11) target bundleno = 2489 (0x9b9), region = 44  ;;  %s313_s24 = sand.u32 (!%p2176_p11), 1, %s2008_s28  }
  0x55   : > { %s1484_s22 = sshll.u32 (!%p2176_p11), %s313_s24, 4  ;;  %s314_s27 = scalar_lea.sflag (!%p2176_p11), [#allocation4], %s313_s24 }
  0x56   : > { %s2263_s23 = scalar_lea.vmem (!%p2176_p11), [#allocation3], %s1484_s22 }
  0x59   : > { %1975 = dma.done.wait (%p2160_p3), %s314_s27, 256  }
  0x5a   : > { %1977 = vsyncadd (%p2160_p3), %s314_s27, 4294967040 }
  0x5b   : > { %1979 = dma.done.wait (%p2151_p1), [#allocation7], 1024  }
  0x5c   : > { %1981 = vsyncadd (%p2151_p1), [#allocation7], 4294966272  ;;  %s2274_s2 = sand.u32 1, %s1996_s25   ;;  %p364_p9 = scmp.lt.s32.totalorder %s2020_s8, 1 }
  0x5d   : > { %s1487_s4 = sshll.u32 %s2274_s2, 3  ;;  %s1488_s6 = sshll.u32 %s2274_s2, 5 }
  0x5e   : > { %s2280_s19 = scalar_select %p364_p9, %s2020_s8, 1 }
  0x5f   : > { %s2286_s1 = scalar_lea.vmem [#allocation9], %s1487_s4  ;;  %s2288_s14 = scalar_lea.vmem [#allocation10], %s1488_s6 }
  0x60   : > { %s366_s13 = scalar_lea.vmem %s2518_s5, %s2280_s19  ;;  %p1489_p1 = scmp.ne.s32.totalorder %s2016_s30, 0 }
  0x61   : > { %s2555_s15 = sld [smem:[#allocation24_spill]] (!%p1489_p1) }
  0x62   : > { %370 = sbr.rel (%p1489_p1) target bundleno = 310 (0x136), region = 60 }
  0x67   : > { %v376_v0 = vld [vmem:[#allocation8 + $0x18] sm:$0xff]  ;;  %v375_v1 = vld [vmem:[#allocation8 + $0x10] sm:$0xff]  ;;  %vm384_vm0 = vcmask 261120   ;;  %v374_v3 = vld [vmem:[#allocation8 + $0x8] sm:$0xff]  ;;  %vm466_vm1 = vcmask 523264  }
  0x68   : > { %1560 = vmatprep.subr.mxu0 %v376_v0  ;;  %v371_v2 = vld [vmem:[%s2263_s23] sm:$0xff]  ;;  %v372_v5 = vld [vmem:[%s2263_s23 + $0x8] sm:$0xff] }
  0x69   : > { %1561 = vmatpush3.msra.mxu0 %v376_v0  ;;  %1568 = vmatprep.mubr.msk.f32.mxu0 %vm384_vm0, %v371_v2  ;;  %v373_v4 = vld [vmem:[#allocation8] sm:$0xff]  ;;  %v1490_v6 = vld [vmem:[%s2555_s15] ss:$0 sm:$0xff] }
  0x6a   : > { %1562 = vmatprep.subr.mxu0 %v375_v1 }
  0x6b   : > { %1563 = vmatpush3.msra.mxu0 %v375_v1 }
  0x6c   : > { %1564 = vmatprep.subr.mxu0 %v374_v3 }
  0x6d   : > { %1565 = vmatpush3.msra.mxu0 %v374_v3 }
  0x6e   : > { %1566 = vmatprep.subr.mxu0 %v373_v4 }
  0x6f   : > { %1567 = vmatpush3.msra.mxu0 %v373_v4 }
  0x70   : > { %1569 = vmatmul.mubr.msk.f32.vlgmr.msra.gmra.mxu0 %vm384_vm0, %v372_v5 }
 0x130   : > { %v1570_v7 = vpop.f32.mrf.mxu0 }
 0x131   : > { %v463_v8 = vadd.f32 %v1570_v7, %v1490_v6 }
 0x132   : > { %v457_v9 = vpop.f32.mrf.mxu0 }
 0x133   : > { %468 = vst.msk [vmem:[#allocation2 + $0x8] sm:$0xff] %vm466_vm1, %v463_v8  ;;  %v458_v10 = vadd.f32 %v1490_v6, %v457_v9 }
 0x135   : > { %467 = vst.msk [vmem:[#allocation2] sm:$0xff] %vm466_vm1, %v458_v10 }
 0x136 PF: > { %v475_v11 = vld [vmem:[#allocation6 + $0x18] sm:$0xff]  ;;  %s1493_s17 = sshll.u32 %s2016_s30, 3  ;;  %v2039_v12 = vmov 0.0   ;;  %v474_v13 = vld [vmem:[#allocation6 + $0x10] sm:$0xff]  ;;  %vm2040_vm2 = vmmov 0   ;;  %vm566_vm3 = vcmask 64512  }
 0x137   : > { %1571 = vmatprep.subr.mxu0 %v2039_v12  ;;  %1579 = vmatprep.mubr.msk.f32.mxu0 %vm2040_vm2, %v2039_v12  ;;  %v473_v15 = vld [vmem:[#allocation6 + $0x8] sm:$0xff]  ;;  %s470_s21 = scalar_lea.vmem %s2263_s23, %s1493_s17 [#allocation3]  ;;  %s2041_s24 = smov 120   ;;  %v472_v17 = vld [vmem:[#allocation6] sm:$0xff]  ;;  %vm483_vm4 = vcmask 261120   ;;  %v2345_v26 = vld [vmem:[%s366_s13] ss:$0 sm:$0xff] }
 0x138   : > { %1572 = vmatpush3.msra.mxu0 %v475_v11  ;;  %1582 = vmatprep.subr.mxu1 %v2039_v12  ;;  %v471_v18 = vld [vmem:[%s470_s21] sm:$0xff]  ;;  %s2556_s23 = sld [smem:[#allocation22_spill]]  ;;  %vm646_vm5 = vcmask 130048   ;;  %s2042_s16 = smov 96  }
 0x139   : > { %1573 = vmatprep.subr.mxu0 %v2039_v12  ;;  %1586 = vmatprep.mubr.msk.f32.mxu1 %vm2040_vm2, %v2039_v12  ;;  %s2043_s12 = smov 88   ;;  %s2044_s3 = smov 112  }
 0x13a   : > { %v2300_v14 = vld [vmem:[#allocation2 + $0x8] sm:$0xff]  ;;  %1574 = vmatpush3.msra.mxu0 %v474_v13  ;;  %s2045_s19 = smov 80   ;;  %s2046_s13 = smov 104  }
 0x13b   : > { %746 = vrot.lane.b32.xlu0 %v2300_v14, %s2041_s24  ;;  %1583 = vmatpush3.xpose.msk.msra.mxu1 %vm566_vm3, %v2300_v14  ;;  %s2047_s20 = smov 72   ;;  %s2048_s15 = smov 8  }
 0x13c   : > { %v2308_v16 = vld [vmem:[#allocation2] sm:$0xff]  ;;  %1575 = vmatprep.subr.mxu0 %v2039_v12  ;;  %1584 = vmatprep.subr.mxu1 %v2039_v12  ;;  %s2049_s17 = smov 16  }
 0x13d   : > { %1576 = vmatpush3.msra.mxu0 %v473_v15 }
 0x13e   : > { %1577 = vmatprep.subr.mxu0 %v2039_v12  ;;  %v1494_v19 = vld [vmem:[%s2556_s23] ss:$0 sm:$0xff]  ;;  %s1324_s23 = sshll.u32 %s2288_s14, 4  ;;  %s2420_s23 = int_to_ptr.vmem [resolvable:$true] %s1324_s23 }
 0x13f   : > { %744 = vrot.lane.b32.xlu0 %v2308_v16, %s2041_s24  ;;  %1578 = vmatpush3.msra.mxu0 %v472_v17 }
 0x140   : > { %1585 = vmatpush3.xpose.msk.msra.mxu1 %vm566_vm3, %v2308_v16  ;;  %1580 = vmatmul.mubr.msk.f32.vlgmr.msra.gmra.mxu0 %vm483_vm4, %v471_v18 }
 0x141   : > { %1596 = vmatprep.subr.mxu1 %v2039_v12  ;;  %1589 = vmatprep.subr.mxu0 %v2039_v12 }
 0x142   : > { %1593 = vmatprep.mubr.msk.f32.mxu0 %vm2040_vm2, %v2039_v12 }
 0x1ad   : > { %v747_v20 = vpop.permute.xlu0 %746 }
 0x1b1   : > { %v745_v24 = vpop.permute.xlu0 %744 }
 0x200   : > { %v553_v21 = vpop.f32.mrf.mxu0 }
 0x201   : > { %v2326_v22 = vadd.f32 %v1494_v19, %v553_v21 }
 0x202   : > { %v1581_v23 = vpop.f32.mrf.mxu0 }
 0x203   : > { %740 = vrot.lane.b32.xlu1 %v2326_v22, %s2041_s24  ;;  %1587 = vmatmul.mubr.msk.f32.vlgmr.msra.gmra.mxu1 %vm566_vm3, %v2326_v22  ;;  %s1520_s24 = sshll.u32 %s2020_s8, 3 }
 0x204   : > { %1597 = vmatpush3.xpose.msk.msra.mxu1 %vm566_vm3, %v747_v20  ;;  %1600 = vmatprep.mubr.msk.f32.mxu1 %vm2040_vm2, %v2039_v12  ;;  %s1321_s22 = sadd.s32 %s2016_s30, %s1520_s24 }
 0x205   : > { %1598 = vmatprep.subr.mxu1 %v2039_v12  ;;  %s1521_s27 = sshll.u32 %s1321_s22, 7 }
 0x208   : > { %1599 = vmatpush3.xpose.msk.msra.mxu1 %vm566_vm3, %v745_v24 }
 0x209   : > { %1617 = vmatprep.subr.mxu1 %v2039_v12 }
 0x275   : > { %v741_v25 = vpop.permute.xlu1 %740 }
 0x276   : > { %1601 = vmatmul.mubr.msk.f32.vlgmr.msra.gmra.mxu1 %vm566_vm3, %v741_v25 }
 0x277   : > { %1621 = vmatprep.mubr.msk.f32.mxu1 %vm2040_vm2, %v2039_v12 }
 0x2c3   : > { %v642_v27 = vpop.f32.mrf.mxu1 }
 0x2c4   : > { %v643_v28 = vadd.f32 %v2345_v26, %v642_v27 }
 0x2c5   : > { %v1588_v29 = vpop.f32.mrf.mxu1 }
 0x2c6   : > { %v647_v30 = vsel %vm646_vm5, %v643_v28, -inf }
 0x2c7   : > { %648 = vmax.xlane.f32.xlu1 %v647_v30 }
 0x2d8   : > { %659 = vrot.lane.b32.xlu1 %v2308_v16, %s2042_s16 }
 0x2dc   : > { %839 = vrot.lane.b32.xlu1 %v2300_v14, %s2043_s12 }
 0x2e0   : > { %924 = vrot.lane.b32.xlu1 %v2300_v14, %s2044_s3 }
 0x336   : > { %v820_v31 = vpop.f32.mrf.mxu1 }
 0x337   : > { %v821_v32 = vadd.f32 %v2345_v26, %v820_v31 }
 0x338   : > { %v1602_v33 = vpop.f32.mrf.mxu1 }
 0x339   : > { %v824_v34 = vsel %vm646_vm5, %v821_v32, -inf }
 0x33a   : > { %825 = vmax.xlane.f32.xlu0 %v824_v34 }
 0x350   : > { %661 = vrot.lane.b32.xlu0 %v2300_v14, %s2042_s16  ;;  %v649_v35 = vpop.xlane.xlu1 %648  ;;  %s2558_s16 = sld [smem:[#allocation26_spill]] }
 0x351   : > { %v650_v36 = vsub.f32 %v643_v28, %v649_v35 }
 0x353   : > { %v651_v37 = vmul.f32 1.442695, %v650_v36 }
 0x354   : > { %v660_v44 = vpop.permute.xlu1 %659 }
 0x355   : > { %1782 = vpow2.f32 %v651_v37 }
 0x358   : > { %v840_v50 = vpop.permute.xlu1 %839 }
 0x35c   : > { %v925_v52 = vpop.permute.xlu1 %924 }
 0x362   : > { %v1783_v38 = vpop.eup %1782 }
 0x363   : > { %v653_v39 = vsel %vm646_vm5, %v1783_v38, 0.0 }
 0x36f   : > { %654 = vadd.xlane.f32.xlu0 %v653_v39 }
 0x385   : > { %837 = vrot.lane.b32.xlu0 %v2308_v16, %s2043_s12  ;;  %s2418_s12 = scalar_lea.hbm %s2558_s16, %s1521_s27 }
 0x389   : > { %922 = vrot.lane.b32.xlu0 %v2308_v16, %s2044_s3 }
 0x3c3   : > { %v826_v40 = vpop.xlane.xlu0 %825 }
 0x3c4   : > { %v827_v41 = vsub.f32 %v821_v32, %v826_v40 }
 0x3c6   : > { %v828_v42 = vmul.f32 1.442695, %v827_v41 }
 0x3c7   : > { %v662_v43 = vpop.permute.xlu0 %661 }
 0x3c8   : > { %1784 = vpow2.f32 %v828_v42  ;;  %1590 = vmatpush3.msra.mxu0 %v662_v43 }
 0x3c9   : > { %1591 = vmatprep.subr.mxu0 %v2039_v12 }
 0x3ca   : > { %1592 = vmatpush3.msra.mxu0 %v660_v44 }
 0x3cb   : > { %1603 = vmatprep.subr.mxu0 %v2039_v12 }
 0x3d5   : > { %v1785_v45 = vpop.eup %1784 }
 0x3d6   : > { %v830_v46 = vsel %vm646_vm5, %v1785_v45, 0.0 }
 0x3d7   : > { %831 = vadd.xlane.f32.xlu1 %v830_v46 }
 0x3e8   : > { %918 = vrot.lane.b32.xlu1 %v2326_v22, %s2044_s3  ;;  %s1295_s3 = scalar_lea.sflag [#allocation11], %s2274_s2 }
 0x3ec   : > { %1015 = vrot.lane.b32.xlu1 %v2308_v16, %s2045_s19 }
 0x3f8   : > { %v655_v47 = vpop.xlane.xlu0 %654 }
 0x3f9   : > { %1786 = vrcp.f32 %v655_v47 }
 0x3fc   : > { %v838_v51 = vpop.permute.xlu0 %837 }
 0x400   : > { %v923_v56 = vpop.permute.xlu0 %922 }
 0x406   : > { %v1787_v48 = vpop.eup %1786 }
 0x407   : > { %v657_v49 = vmul.f32 %v1787_v48, %v1783_v38 }
 0x409   : > { %658 = vst.msk [vmem:[%s2288_s14] sm:$0xff] %vm646_vm5, %v657_v49  ;;  %1594 = vmatmul.mubr.msk.f32.vlgmr.msra.gmra.mxu0 %vm646_vm5, %v657_v49 }
 0x40a   : > { %1604 = vmatpush3.msra.mxu0 %v840_v50  ;;  %1607 = vmatprep.mubr.msk.f32.mxu0 %vm2040_vm2, %v2039_v12 }
 0x40b   : > { %1605 = vmatprep.subr.mxu0 %v2039_v12 }
 0x40c   : > { %1606 = vmatpush3.msra.mxu0 %v838_v51 }
 0x40d   : > { %1610 = vmatprep.subr.mxu0 %v2039_v12 }
 0x460   : > { %v832_v53 = vpop.xlane.xlu1 %831 }
 0x461   : > { %1788 = vrcp.f32 %v832_v53 }
 0x464   : > { %v919_v57 = vpop.permute.xlu1 %918 }
 0x468   : > { %v1016_v6 = vpop.permute.xlu1 %1015 }
 0x46e   : > { %v1789_v54 = vpop.eup %1788 }
 0x46f   : > { %v834_v55 = vmul.f32 %v1789_v54, %v1785_v45 }
 0x471   : > { %1504 = vst.msk [vmem:[%s2288_s14 + $0x8] sm:$0xff] %vm646_vm5, %v834_v55  ;;  %1608 = vmatmul.mubr.msk.f32.vlgmr.msra.gmra.mxu0 %vm646_vm5, %v834_v55 }
 0x472   : > { %1611 = vmatpush3.xpose.msk.msra.mxu0 %vm566_vm3, %v925_v52  ;;  %1614 = vmatprep.mubr.msk.f32.mxu0 %vm2040_vm2, %v2039_v12 }
 0x473   : > { %1612 = vmatprep.subr.mxu0 %v2039_v12 }
 0x476   : > { %1613 = vmatpush3.xpose.msk.msra.mxu0 %vm566_vm3, %v923_v56 }
 0x477   : > { %1631 = vmatprep.subr.mxu0 %v2039_v12 }
 0x479   : > { %1615 = vmatmul.mubr.msk.f32.vlgmr.msra.gmra.mxu0 %vm566_vm3, %v919_v57 }
 0x47a   : > { %1635 = vmatprep.mubr.msk.f32.mxu0 %vm2040_vm2, %v2039_v12 }
 0x4c9   : > { %v2382_v58 = vpop.f32.mrf.mxu0 }
 0x4cb   : > { %v1595_v59 = vpop.f32.mrf.mxu0 }
 0x531   : > { %v912_v60 = vpop.f32.mrf.mxu0 }
 0x533   : > { %v1609_v61 = vpop.f32.mrf.mxu0 }
 0x539   : > { %v998_v62 = vpop.f32.mrf.mxu0 }
 0x53a   : > { %v999_v63 = vadd.f32 %v2345_v26, %v998_v62 }
 0x53b   : > { %v1616_v0 = vpop.f32.mrf.mxu0 }
 0x53c   : > { %v1002_v1 = vsel %vm646_vm5, %v999_v63, -inf }
 0x53d   : > { %1003 = vmax.xlane.f32.xlu0 %v1002_v1 }
 0x553   : > { %1017 = vrot.lane.b32.xlu0 %v2300_v14, %s2045_s19  ;;  %s1878_s19 = scalar_lea.vmem %s2420_s23, 512 }
 0x554   : > { %p1879_p3 = scmp.ne.s32.totalorder %s2420_s23, %s1878_s19 }
 0x556   : > { %p1880_p11 = pnand %p1879_p3, %p2166_p7 }
 0x557   : > { %1102 = vrot.lane.b32.xlu0 %v2300_v14, %s2046_s13 }
 0x558   : > { %p1881_p5 = pneg %p1880_p11 }
 0x55b   : > { %1096 = vrot.lane.b32.xlu0 %v2326_v22, %s2046_s13 }
 0x5c6   : > { %v1004_v2 = vpop.xlane.xlu0 %1003 }
 0x5c7   : > { %v1005_v3 = vsub.f32 %v999_v63, %v1004_v2 }
 0x5c9   : > { %v1006_v4 = vmul.f32 1.442695, %v1005_v3 }
 0x5ca   : > { %v1018_v5 = vpop.permute.xlu0 %1017 }
 0x5cb   : > { %1790 = vpow2.f32 %v1006_v4  ;;  %1618 = vmatpush3.msra.mxu1 %v1018_v5 }
 0x5cc   : > { %1619 = vmatprep.subr.mxu1 %v2039_v12 }
 0x5cd   : > { %1620 = vmatpush3.msra.mxu1 %v1016_v6 }
 0x5ce   : > { %1624 = vmatprep.subr.mxu1 %v2039_v12  ;;  %v1103_v13 = vpop.permute.xlu0 %1102 }
 0x5d2   : > { %v1097_v17 = vpop.permute.xlu0 %1096 }
 0x5d8   : > { %v1791_v7 = vpop.eup %1790 }
 0x5d9   : > { %v1008_v8 = vsel %vm646_vm5, %v1791_v7, 0.0 }
 0x5da   : > { %1009 = vadd.xlane.f32.xlu1 %v1008_v8 }
 0x5eb   : > { %1100 = vrot.lane.b32.xlu1 %v2308_v16, %s2046_s13  ;;  %s2050_s13 = smov [#allocation10]  }
 0x663   : > { %v1010_v9 = vpop.xlane.xlu1 %1009 }
 0x664   : > { %1792 = vrcp.f32 %v1010_v9 }
 0x667   : > { %v1101_v15 = vpop.permute.xlu1 %1100 }
 0x671   : > { %v1793_v10 = vpop.eup %1792 }
 0x672   : > { %v1012_v11 = vmul.f32 %v1793_v10, %v1791_v7 }
 0x674   : > { %1509 = vst.msk [vmem:[%s2288_s14 + $0x10] sm:$0xff] %vm646_vm5, %v1012_v11  ;;  %1622 = vmatmul.mubr.msk.f32.vlgmr.msra.gmra.mxu1 %vm646_vm5, %v1012_v11 }
 0x675   : > { %1625 = vmatpush3.xpose.msk.msra.mxu1 %vm566_vm3, %v1103_v13  ;;  %1628 = vmatprep.mubr.msk.f32.mxu1 %vm2040_vm2, %v2039_v12 }
 0x676   : > { %1626 = vmatprep.subr.mxu1 %v2039_v12 }
 0x679   : > { %1627 = vmatpush3.xpose.msk.msra.mxu1 %vm566_vm3, %v1101_v15 }
 0x67c   : > { %1629 = vmatmul.mubr.msk.f32.vlgmr.msra.gmra.mxu1 %vm566_vm3, %v1097_v17 }
 0x734   : > { %v1090_v18 = vpop.f32.mrf.mxu1 }
 0x736   : > { %v1623_v19 = vpop.f32.mrf.mxu1 }
 0x73c   : > { %v1176_v20 = vpop.f32.mrf.mxu1 }
 0x73d   : > { %v1177_v21 = vadd.f32 %v2345_v26, %v1176_v20 }
 0x73e   : > { %v1630_v22 = vpop.f32.mrf.mxu1 }
 0x73f   : > { %v1180_v23 = vsel %vm646_vm5, %v1177_v21, -inf }
 0x740   : > { %1181 = vmax.xlane.f32.xlu1 %v1180_v23 }
 0x751   : > { %1193 = vrot.lane.b32.xlu1 %v2308_v16, %s2047_s20 }
 0x755   : > { %1273 = vrot.lane.b32.xlu1 %v912_v60, %s2048_s15 }
 0x7c9   : > { %v1182_v24 = vpop.xlane.xlu1 %1181 }
 0x7ca   : > { %v1183_v25 = vsub.f32 %v1177_v21, %v1182_v24 }
 0x7cc   : > { %v1184_v27 = vmul.f32 1.442695, %v1183_v25 }
 0x7cd   : > { %v1194_v30 = vpop.permute.xlu1 %1193 }
 0x7ce   : > { %1794 = vpow2.f32 %v1184_v27 }
 0x7db   : > { %v1795_v28 = vpop.eup %1794 }
 0x7dc   : > { %v1186_v29 = vsel %vm646_vm5, %v1795_v28, 0.0 }
 0x7dd   : > { %1187 = vadd.xlane.f32.xlu0 %v1186_v29 }
 0x7f3   : > { %1195 = vrot.lane.b32.xlu0 %v2300_v14, %s2047_s20  ;;  %s1882_s20 = sshll.u32 %s2050_s13, 4  ;;  %s1883_s20 = int_to_ptr.vmem [resolvable:$false] %s1882_s20 }
 0x7f4   : > { %p1885_p12 = scmp.lt.s32.totalorder %s2420_s23, %s1883_s20 }
 0x7f7   : > { %1277 = vrot.lane.b32.xlu0 %v1090_v18, %s2049_s17 }
 0x866   : > { %v1188_v16 = vpop.xlane.xlu0 %1187 }
 0x867   : > { %1796 = vrcp.f32 %v1188_v16 }
 0x86a   : > { %v1196_v26 = vpop.permute.xlu0 %1195 }
 0x86b   : > { %1632 = vmatpush3.msra.mxu0 %v1196_v26 }
 0x86c   : > { %1633 = vmatprep.subr.mxu0 %v2039_v12 }
 0x86d   : > { %1634 = vmatpush3.msra.mxu0 %v1194_v30 }
 0x874   : > { %v1797_v31 = vpop.eup %1796 }
 0x875   : > { %v1190_v32 = vmul.f32 %v1797_v31, %v1795_v28 }
 0x877   : > { %1514 = vst.msk [vmem:[%s2288_s14 + $0x18] sm:$0xff] %vm646_vm5, %v1190_v32  ;;  %1636 = vmatmul.mubr.msk.f32.vlgmr.msra.gmra.mxu0 %vm646_vm5, %v1190_v32  ;;  %s1884_s14 = scalar_lea.vmem %s1883_s20, 1024 }
 0x878   : > { %p1886_p0 = scmp.lt.s32.totalorder %s1884_s14, %s1878_s19 }
 0x87a   : > { %p1887_p2 = por %p1886_p0, %p1885_p12 }
 0x87c   : > { %p1888_p4 = pnand %p1887_p2, %p1881_p5 }
 0x87e   : > { %1891 = shalt.err (!%p1888_p4)
}
 0x87f   : > { %s1892_s17 = scalar_lea.hbm %s2418_s12, 512  ;;  %s1896_s27 = scalar_lea.hbm %s2558_s16, 2048 }
 0x880   : > { %p1893_p13 = scmp.ne.s32.totalorder %s2418_s12, %s1892_s17  ;;  %p1897_p6 = scmp.lt.s32.totalorder %s2418_s12, %s2558_s16 }
 0x881   : > { %p1898_p9 = scmp.lt.s32.totalorder %s1896_s27, %s1892_s17 }
 0x882   : > { %p1894_p8 = pnand %p1893_p13, %p2166_p7 }
 0x883   : > { %p1899_p1 = por %p1898_p9, %p1897_p6 }
 0x884   : > { %p1895_p10 = pneg %p1894_p8 }
 0x886   : > { %p1900_p3 = pnand %p1899_p1, %p1895_p10 }
 0x888   : > { %1903 = shalt.err (!%p1900_p3)
}
 0x889   : > { %s2051_s19 = smov 128   ;;  %s2052_s13 = smov 256   ;;  %v1274_v33 = vpop.permute.xlu1 %1273  ;;  %v1278_v34 = vpop.permute.xlu0 %1277  ;;  %vm1286_vm6 = vcmask 195584  }
 0x88a   : > { %1649 = dma.vmem_to_hbm [thread:$0]  (%p2166_p7), %s2420_s23, 512, %s2418_s12, %s1295_s3, %s2051_s19, %s2052_s13, %s2048_s15   ;;  %v1284_v35 = vsel %vm566_vm3, %v2382_v58, %v1274_v33 }
 0x88b   : > { %s2053_s20 = smov 24   ;;  %s1518_s14 = sshll.u32 %s2020_s8, 1  ;;  %v1285_v36 = vsel %vm646_vm5, %v1284_v35, %v1278_v34 }
 0x88c   : > { %s1306_s17 = sadd.s32 %s2016_s30, %s1518_s14  ;;  %s1310_s22 = sshll.u32 %s2286_s1, 4  ;;  %s1311_s22 = int_to_ptr.vmem [resolvable:$true] %s1310_s22 }
 0x88d   : > { %s1519_s24 = sshll.u32 %s1306_s17, 7  ;;  %s2559_s12 = sld [smem:[#allocation25_spill]] }
 0x88e   : > { %s1290_s30 = scalar_lea.sflag [#allocation5], %s2274_s2  ;;  %s1904_s8 = scalar_lea.vmem %s1311_s22, 128 }
 0x88f   : > { %p1905_p11 = scmp.ne.s32.totalorder %s1311_s22, %s1904_s8  ;;  %s2054_s27 = smov [#allocation9]  }
 0x890   : > { %s1908_s4 = sshll.u32 %s2054_s27, 4  ;;  %s1909_s4 = int_to_ptr.vmem [resolvable:$false] %s1908_s4 }
 0x891   : > { %p1906_p5 = pnand %p1905_p11, %p2166_p7  ;;  %s1910_s6 = scalar_lea.vmem %s1909_s4, 256 }
 0x892   : > { %p1911_p0 = scmp.lt.s32.totalorder %s1311_s22, %s1909_s4  ;;  %p1912_p2 = scmp.lt.s32.totalorder %s1910_s6, %s1904_s8 }
 0x893   : > { %s2455_s3 = scalar_lea.hbm %s2559_s12, %s1519_s24  ;;  %p1907_p12 = pneg %p1906_p5 }
 0x894   : > { %p1913_p4 = por %p1912_p2, %p1911_p0 }
 0x896   : > { %p1914_p13 = pnand %p1913_p4, %p1907_p12 }
 0x937   : > { %v1268_v12 = vpop.f32.mrf.mxu0 }
 0x938   : > { %1281 = vrot.lane.b32.xlu1 %v1268_v12, %s2053_s20 }
 0x939   : > { %v1637_v14 = vpop.f32.mrf.mxu0 }
 0x9aa   : > { %v1282_v37 = vpop.permute.xlu1 %1281 }
 0x9ab   : > { %v1287_v38 = vsel %vm1286_vm6, %v1285_v36, %v1282_v37 }
 0x9ac   : > { %1288 = vst.msk [vmem:[%s2286_s1] sm:$0xff] %vm483_vm4, %v1287_v38 }
 0x9ad   : > { %1917 = shalt.err (!%p1914_p13)
}
 0x9ae   : > { %s1918_s1 = scalar_lea.hbm %s2455_s3, 128  ;;  %s1922_s13 = scalar_lea.hbm %s2559_s12, 512 }
 0x9af   : > { %p1919_p8 = scmp.ne.s32.totalorder %s2455_s3, %s1918_s1  ;;  %p1923_p9 = scmp.lt.s32.totalorder %s2455_s3, %s2559_s12 }
 0x9b0   : > { %p1924_p1 = scmp.lt.s32.totalorder %s1922_s13, %s1918_s1 }
 0x9b1   : > { %p1920_p10 = pnand %p1919_p8, %p2166_p7 }
 0x9b2   : > { %p1925_p3 = por %p1924_p1, %p1923_p9 }
 0x9b3   : > { %p1921_p6 = pneg %p1920_p10 }
 0x9b5   : > { %p1926_p11 = pnand %p1925_p3, %p1921_p6 }
 0x9b7   : > { %1929 = shalt.err (!%p1926_p11)
}
 0x9b8   : > { %1648 = dma.vmem_to_hbm [thread:$0]  (%p2166_p7), %s1311_s22, 128, %s2455_s3, %s1290_s30  }
 0x9b9 PF: > { %s2560_s17 = sld [smem:[#allocation16_spill]]  ;;  %p1675_p5 = scmp.ge.s32.totalorder %s2032_s11, 2 }
 0x9ba   : > { %s2561_s24 = sld [smem:[#allocation19_spill]] }
 0x9bf   : > { %s1339_s15 = sand.u32 1, %s2560_s17  }
 0x9c0   : > { %p2562_p12 = scmp.ne.s32.totalorder %s2561_s24, 0  ;;  %s1340_s23 = scalar_lea.sflag [#allocation5], %s1339_s15 }
 0x9c2   : > { %p1664_p0 = pnand %p1675_p5, %p2562_p12 }
 0x9c4   : > { %p1665_p2 = pneg %p1664_p0 }
 0x9c6   : > { %1983 = dma.done.wait (%p1665_p2), %s1340_s23, 128  }
 0x9c7   : > { %1985 = vsyncadd (%p1665_p2), %s1340_s23, 4294967168  ;;  %s1349_s8 = scalar_lea.sflag [#allocation11], %s1339_s15 }
 0x9c8   : > { %1987 = dma.done.wait (%p1665_p2), %s1349_s8, 512  }
 0x9c9   : > { %1989 = vsyncadd (%p1665_p2), %s1349_s8, 4294966784  ;;  %s28_s11 = sadd.s32 1, %s2032_s11   ;;  %s2563_s30 = sld [smem:[#allocation17_spill]] }
 0x9ca   : > { %p25_p4 = scmp.ge.s32.totalorder %s28_s11, 6   ;;  %s2564_s21 = sld [smem:[#allocation20_spill]] }
 0x9cb   : > { %s2565_s24 = smov %s1996_s25  ;;  %s2566_s25 = smov %s2000_s26 }
 0x9cc   : > { %s2567_s26 = smov %s2243_s9  ;;  %s2568_s27 = smov %s2008_s28 }
 0x9cd   : > { %s2569_s28 = smov %s2012_s29  ;;  %s2570_s29 = smov %s2238_s7 }
 0x9ce   : > { %s2571_s8 = smov %s2028_s10  ;;  %s2573_s10 = smov %s2579_s18 }
 0x9cf   :  { %27 = sbr.rel (!%p25_p4) target bundleno = 19 (0x13), region = 125 }
 0x9d0   : > { %s2572_s9 = smov %s2564_s21 }
 0x9d4   :  { %1354 = vsyncpa [#allocation4], 1 }
 0x9d5   :  { %1356 = vsyncpa [#allocation4 + $0x1], 1 }
 0x9d6   :  { %1357 = vsyncpa [#allocation7], 1 }
 0x9d7   :  { %1358 = vsyncpa [#allocation5], 1 }
 0x9d8   :  { %1360 = vsyncpa [#allocation5 + $0x1], 1 }
 0x9d9   :  { %1361 = vsyncpa [#allocation11], 1 }
 0x9da   :  { %1363 = vsyncpa [#allocation11 + $0x1], 1 }

</bundles_post_ra>
